<compile_context>
chip_gen: v7x
topology: tpu7x:2x2x1
jax: 0.10.0
libtpu: 0.0.40
codegen_flags: <defaults>
</compile_context>

<pallas_src>
import math
import functools

import jax
import jax.numpy as jnp
from jax.experimental import pallas as pl
from jax.experimental.pallas import tpu as pltpu


NEG_SLOPE = 0.01  # PyTorch nn.LeakyReLU default negative_slope


def _round_up(x, m):
    return ((x + m - 1) // m) * m


def _tpu_caps():
    """(vmem_capacity_bytes, num_tensorcores_per_chip) with defensive fallbacks."""
    vmem_cap = None
    try:
        vmem_cap = int(pltpu.get_tpu_info().vmem_capacity_bytes)
    except Exception:
        pass

    kind = ""
    try:
        kind = jax.devices()[0].device_kind.lower()
    except Exception:
        pass

    if vmem_cap is None:
        # v7x has 64 MiB per TC; v5e/v6e have 128 MiB. Be conservative if unknown.
        vmem_cap = (64 << 20) if ("7" in kind) else (128 << 20) if kind else (64 << 20)

    # Multi-TensorCore chips (megacore / v7x) benefit from splitting a small batch in two.
    multi_tc = any(tag in kind for tag in ("v4", "v5p", "7"))
    return vmem_cap, (2 if multi_tc else 1)


def _mlp_kernel(use_tanh, n_layers, compute_dtype, x_ref, *refs):
    """Fused MLP over one batch tile.

    refs layout: (w0, b0, w1, b1, ..., w_{L-1}, b_{L-1}, o_ref)
    Matmuls run in `compute_dtype` (bf16 or f32) with f32 accumulation; bias add,
    LeakyReLU and tanh are evaluated in f32; inter-layer activations are stored in
    `compute_dtype` (cast fused into the activation).
    """
    o_ref = refs[-1]
    p_refs = refs[:-1]

    h = x_ref[...]
    if h.dtype != compute_dtype:
        h = h.astype(compute_dtype)

    for l in range(n_layers):
        w_ref = p_refs[2 * l]          # [K, N]  (N padded to a multiple of 128)
        b_ref = p_refs[2 * l + 1]      # [1, N]
        acc = jnp.dot(h, w_ref[...], preferred_element_type=jnp.float32)
        acc = acc + b_ref[...].astype(jnp.float32)
        if l < n_layers - 1:
            acc = jnp.maximum(acc, NEG_SLOPE * acc)        # LeakyReLU, 2 VALU ops
            h = acc.astype(compute_dtype)
        else:
            if use_tanh:
                acc = jnp.tanh(acc)
            o_ref[...] = acc.astype(o_ref.dtype)


def _pad_params(params, dim):
    """Zero-pad every weight's N (and matching next-layer K) up to a multiple of 128.

    The input feature dim (K of the first layer) is left unpadded so x never needs an
    HBM repack. Zero padding keeps the math exact: padded hidden columns stay 0 through
    bias/LeakyReLU and meet zero-padded K rows in the next layer.
    """
    padded = []
    k_prev_pad = dim
    for (w, b) in params:
        k, n = w.shape
        n_pad = _round_up(n, 128)
        k_pad = k_prev_pad
        if (k_pad, n_pad) != (k, n):
            w = jnp.pad(w, ((0, k_pad - k), (0, n_pad - n)))
        if n_pad != n:
            b = jnp.pad(b, ((0, 0), (0, n_pad - n)))
        padded.append((w, b))
        k_prev_pad = n_pad
    return padded


def basic_fully_connected_net(x, params, *, use_tanh=False, use_bn=False,
                              batch_tile=None, out_dtype=jnp.float32):
    """Run the fused MLP Pallas kernel.

    x:      [B, dim] float32 (or bfloat16)
    params: list of (W [in, out], b [1, out]) tuples, length depth + 2.
            W may be float32 or bfloat16 (bf16 recommended on v6e/v7x); b is float32.
    batch_tile: optional override for rows per grid step; by default it is derived from
            the chip's VMEM capacity.
    """
    assert not use_bn, "use_bn=True (BatchNorm1d) is not implemented"  # TODO(synk)

    B, dim = x.shape
    n_layers = len(params)
    out_dim = params[-1][0].shape[1]

    vmem_cap, num_tc = _tpu_caps()

    # ---- pad weight N dims (hidden + output) to lane-dense multiples of 128 ---------
    padded_params = _pad_params(params, dim)
    out_pad = padded_params[-1][0].shape[1]

    compute_dtype = padded_params[0][0].dtype          # weight dtype drives the matmul dtype
    x_in = x.astype(compute_dtype) if x.dtype != compute_dtype else x
    x_itemsize = jnp.dtype(compute_dtype).itemsize
    out_itemsize = jnp.dtype(out_dtype).itemsize

    def _nbytes(a):
        return int(a.size) * a.dtype.itemsize

    param_bytes = sum(_nbytes(w) + _nbytes(b) for (w, b) in padded_params)
    max_width = max(max(w.shape[1] for (w, _) in padded_params), dim)

    # ---- batch tiling: biggest MXU-friendly tile that fits the per-chip VMEM budget --
    def _tile_fits(t):
        io = 2 * t * dim * x_itemsize + 2 * t * out_pad * out_itemsize
        act = 3 * t * max_width * 4
        return io + param_bytes + act <= int(0.6 * vmem_cap)

    b8 = _round_up(B, 8)
    candidates = [batch_tile] if batch_tile is not None else [1024, 512, 256, 128]
    tb = candidates[-1]
    for c in candidates:
        if _tile_fits(c):
            tb = c
            break

    if b8 <= tb:
        if num_tc >= 2 and b8 >= 256:
            tb = _round_up(pl.cdiv(b8, 2), 128)   # split across 2 TensorCores (v7x)
        else:
            tb = b8                                # single tile: no per-step overhead
    else:
        # Prefer a tile that divides B exactly -> no wrapper-side jnp.pad HBM pass.
        for c in candidates:
            if c <= tb and B % c == 0:
                tb = c
                break

    B_pad = _round_up(B, tb)
    grid = (B_pad // tb,)
    if B_pad != B:
        x_in = jnp.pad(x_in, ((0, B_pad - B), (0, 0)))

    flat_params = []
    for (w, b) in padded_params:
        flat_params.append(w)
        flat_params.append(b)

    # ---- VMEM budget (x/out double-buffered, params single- or double-buffered) ------
    io_bytes = 2 * tb * dim * x_itemsize + 2 * tb * out_pad * out_itemsize
    scratch_bytes = 3 * tb * max_width * 4          # live f32 activation slack

    def _budget(param_mult):
        bud = int((io_bytes + param_mult * param_bytes + scratch_bytes) * 1.5) + (4 << 20)
        bud = max(bud, 16 << 20)
        return min(bud, int(0.85 * vmem_cap))

    # ---- cost estimate for XLA scheduling --------------------------------------------
    flops = 2 * B_pad * sum(int(w.shape[0]) * int(w.shape[1]) for (w, _) in padded_params)
    transcendentals = B_pad * out_pad if use_tanh else 0
    bytes_accessed = _nbytes(x_in) + param_bytes + B_pad * out_pad * out_itemsize
    cost = pl.CostEstimate(flops=flops, transcendentals=transcendentals,
                           bytes_accessed=bytes_accessed)

    kernel = functools.partial(_mlp_kernel, use_tanh, n_layers, compute_dtype)
    out_shape = jax.ShapeDtypeStruct((B_pad, out_pad), out_dtype)
    out_spec = pl.BlockSpec((tb, out_pad), lambda i: (i, 0))

    def _run(weight_pipeline_mode, vmem_budget):
        in_specs = [pl.BlockSpec((tb, dim), lambda i: (i, 0))]   # x: tiled over batch
        for (w, b) in padded_params:
            kwargs = {}
            if weight_pipeline_mode is not None:
                kwargs["pipeline_mode"] = weight_pipeline_mode
            in_specs.append(pl.BlockSpec(w.shape, lambda i: (0, 0), **kwargs))
            in_specs.append(pl.BlockSpec(b.shape, lambda i: (0, 0), **kwargs))
        return pl.pallas_call(
            kernel,
            out_shape=out_shape,
            grid=grid,
            in_specs=in_specs,
            out_specs=out_spec,
            compiler_params=pltpu.CompilerParams(
                dimension_semantics=("parallel",),
                vmem_limit_bytes=vmem_budget,
            ),
            cost_estimate=cost,
        )(x_in, *flat_params)

    try:
        # Constant-index weight blocks don't need a second pipeline buffer.
        out_padded = _run(pl.Buffered(1), _budget(1))
    except Exception:
        # Fallback: default double-buffering; budget recomputed with doubled param residency.
        out_padded = _run(None, _budget(2))

    if B_pad == B and out_pad == out_dim:
        return out_padded
    return out_padded[:B, :out_dim]


def init_params(key, dim, depth, hidden_dim, out_dim=None, weight_dtype=jnp.float32):
    """PyTorch-style init: U(-1/sqrt(fan_in), 1/sqrt(fan_in)). W stored [in, out].

    weight_dtype=jnp.bfloat16 is recommended on v6e/v7x (MXU-native; halves weight DMA
    and residency); accumulation is always f32 in the kernel.
    """
    out_dim = dim if out_dim is None else out_dim
    sizes = [(dim, hidden_dim)]
    sizes += [(hidden_dim, hidden_dim) for _ in range(depth)]
    sizes += [(hidden_dim, out_dim)]

    params = []
    for (fan_in, fan_out) in sizes:
        key, kw, kb = jax.random.split(key, 3)
        bound = 1.0 / math.sqrt(fan_in)
        w = jax.random.uniform(kw, (fan_in, fan_out), jnp.float32, -bound, bound)
        b = jax.random.uniform(kb, (1, fan_out), jnp.float32, -bound, bound)
        params.append((w.astype(weight_dtype), b))
    return params


def reference_mlp(x, params, use_tanh=False):
    h = x.astype(jnp.float32)
    n = len(params)
    for l, (w, b) in enumerate(params):
        h = h @ w.astype(jnp.float32) + b.astype(jnp.float32)
        if l < n - 1:
            h = jnp.where(h > 0, h, NEG_SLOPE * h)
    if use_tanh:
        h = jnp.tanh(h)
    return h


if __name__ == "__main__":
    # Module config: BasicFullyConnectedNet(dim=16, depth=2, hidden_dim=32)
    dim, depth, hidden_dim = 16, 2, 32
    B = 8

    key = jax.random.PRNGKey(0)
    key, kx = jax.random.split(key)
    x = jax.random.normal(kx, (B, dim), jnp.float32)

    # 1) f32 weight path (tight tolerance)
    params_f32 = init_params(key, dim, depth, hidden_dim, weight_dtype=jnp.float32)
    out_f32 = jax.block_until_ready(
        basic_fully_connected_net(x, params_f32, use_tanh=False))
    ref_f32 = reference_mlp(x, params_f32, use_tanh=False)
    assert out_f32.shape == (B, dim), out_f32.shape
    assert jnp.allclose(out_f32, ref_f32, atol=1e-5, rtol=1e-5), "f32 mismatch vs reference"

    # 2) bf16-weight / f32-accumulate path (MXU-friendly on v6e/v7x), with tanh
    params_bf16 = init_params(key, dim, depth, hidden_dim, weight_dtype=jnp.bfloat16)
    out_bf16 = jax.block_until_ready(
        basic_fully_connected_net(x, params_bf16, use_tanh=True))
    ref_bf16 = reference_mlp(x, params_bf16, use_tanh=True)
    assert out_bf16.shape == (B, dim), out_bf16.shape
    assert jnp.allclose(out_bf16, ref_bf16, atol=3e-2, rtol=3e-2), "bf16 mismatch vs reference"

    print("KERNEL_OK")
</pallas_src>

<mosaic_0001>
module attributes {stable_mosaic.version = 11 : i64} {
  func.func @_mlp_kernel(%arg0: i32, %arg1: memref<8x16xf32, #tpu.memory_space<vmem>>, %arg2: memref<16x128xf32, #tpu.memory_space<vmem>>, %arg3: memref<1x128xf32, #tpu.memory_space<vmem>>, %arg4: memref<128x128xf32, #tpu.memory_space<vmem>>, %arg5: memref<1x128xf32, #tpu.memory_space<vmem>>, %arg6: memref<128x128xf32, #tpu.memory_space<vmem>>, %arg7: memref<1x128xf32, #tpu.memory_space<vmem>>, %arg8: memref<128x128xf32, #tpu.memory_space<vmem>>, %arg9: memref<1x128xf32, #tpu.memory_space<vmem>>, %arg10: memref<8x128xf32, #tpu.memory_space<vmem>>) attributes {dimension_semantics = [#tpu.dimension_semantics<parallel>], iteration_bounds = array<i64: 1>, scalar_prefetch = 0 : i64, scratch_operands = 0 : i64, tpu.core_type = #tpu.core_type<tc>, window_params = [{transform_indices = @transform_0, window_bounds = array<i64: 8, 16>}, {pipeline_mode = #tpu.pipeline_mode<synchronous>, transform_indices = @transform_1, window_bounds = array<i64: 16, 128>}, {pipeline_mode = #tpu.pipeline_mode<synchronous>, transform_indices = @transform_2, window_bounds = array<i64: 1, 128>}, {pipeline_mode = #tpu.pipeline_mode<synchronous>, transform_indices = @transform_3, window_bounds = array<i64: 128, 128>}, {pipeline_mode = #tpu.pipeline_mode<synchronous>, transform_indices = @transform_4, window_bounds = array<i64: 1, 128>}, {pipeline_mode = #tpu.pipeline_mode<synchronous>, transform_indices = @transform_5, window_bounds = array<i64: 128, 128>}, {pipeline_mode = #tpu.pipeline_mode<synchronous>, transform_indices = @transform_6, window_bounds = array<i64: 1, 128>}, {pipeline_mode = #tpu.pipeline_mode<synchronous>, transform_indices = @transform_7, window_bounds = array<i64: 128, 128>}, {pipeline_mode = #tpu.pipeline_mode<synchronous>, transform_indices = @transform_8, window_bounds = array<i64: 1, 128>}, {transform_indices = @transform_9, window_bounds = array<i64: 8, 128>}]} {
    %c0 = arith.constant 0 : index
    %c0_0 = arith.constant 0 : index
    %0 = vector.load %arg1[%c0, %c0_0] : memref<8x16xf32, #tpu.memory_space<vmem>>, vector<8x16xf32>
    %c0_1 = arith.constant 0 : index
    %c0_2 = arith.constant 0 : index
    %1 = vector.load %arg2[%c0_1, %c0_2] : memref<16x128xf32, #tpu.memory_space<vmem>>, vector<16x128xf32>
    %cst = arith.constant dense<0.000000e+00> : vector<8x128xf32>
    %2 = tpu.matmul %0, %1, %cst {dimension_numbers = #tpu.dot_dimension_numbers<[1], [0], [0], [1], [0, 0, 1, 1], [], []>} : vector<8x16xf32>, vector<16x128xf32>, vector<8x128xf32> -> vector<8x128xf32>
    %c0_3 = arith.constant 0 : index
    %c0_4 = arith.constant 0 : index
    %3 = vector.load %arg3[%c0_3, %c0_4] : memref<1x128xf32, #tpu.memory_space<vmem>>, vector<1x128xf32>
    %4 = vector.broadcast %3 : vector<1x128xf32> to vector<8x128xf32>
    %5 = arith.addf %2, %4 : vector<8x128xf32>
    %cst_5 = arith.constant 0.00999999977 : f32
    %6 = vector.broadcast %cst_5 : f32 to vector<8x128xf32>
    %7 = arith.mulf %6, %5 : vector<8x128xf32>
    %8 = arith.maximumf %5, %7 : vector<8x128xf32>
    %c0_6 = arith.constant 0 : index
    %c0_7 = arith.constant 0 : index
    %9 = vector.load %arg4[%c0_6, %c0_7] : memref<128x128xf32, #tpu.memory_space<vmem>>, vector<128x128xf32>
    %cst_8 = arith.constant dense<0.000000e+00> : vector<8x128xf32>
    %10 = tpu.matmul %8, %9, %cst_8 {dimension_numbers = #tpu.dot_dimension_numbers<[1], [0], [0], [1], [0, 0, 1, 1], [], []>} : vector<8x128xf32>, vector<128x128xf32>, vector<8x128xf32> -> vector<8x128xf32>
    %c0_9 = arith.constant 0 : index
    %c0_10 = arith.constant 0 : index
    %11 = vector.load %arg5[%c0_9, %c0_10] : memref<1x128xf32, #tpu.memory_space<vmem>>, vector<1x128xf32>
    %12 = vector.broadcast %11 : vector<1x128xf32> to vector<8x128xf32>
    %13 = arith.addf %10, %12 : vector<8x128xf32>
    %cst_11 = arith.constant 0.00999999977 : f32
    %14 = vector.broadcast %cst_11 : f32 to vector<8x128xf32>
    %15 = arith.mulf %14, %13 : vector<8x128xf32>
    %16 = arith.maximumf %13, %15 : vector<8x128xf32>
    %c0_12 = arith.constant 0 : index
    %c0_13 = arith.constant 0 : index
    %17 = vector.load %arg6[%c0_12, %c0_13] : memref<128x128xf32, #tpu.memory_space<vmem>>, vector<128x128xf32>
    %cst_14 = arith.constant dense<0.000000e+00> : vector<8x128xf32>
    %18 = tpu.matmul %16, %17, %cst_14 {dimension_numbers = #tpu.dot_dimension_numbers<[1], [0], [0], [1], [0, 0, 1, 1], [], []>} : vector<8x128xf32>, vector<128x128xf32>, vector<8x128xf32> -> vector<8x128xf32>
    %c0_15 = arith.constant 0 : index
    %c0_16 = arith.constant 0 : index
    %19 = vector.load %arg7[%c0_15, %c0_16] : memref<1x128xf32, #tpu.memory_space<vmem>>, vector<1x128xf32>
    %20 = vector.broadcast %19 : vector<1x128xf32> to vector<8x128xf32>
    %21 = arith.addf %18, %20 : vector<8x128xf32>
    %cst_17 = arith.constant 0.00999999977 : f32
    %22 = vector.broadcast %cst_17 : f32 to vector<8x128xf32>
    %23 = arith.mulf %22, %21 : vector<8x128xf32>
    %24 = arith.maximumf %21, %23 : vector<8x128xf32>
    %c0_18 = arith.constant 0 : index
    %c0_19 = arith.constant 0 : index
    %25 = vector.load %arg8[%c0_18, %c0_19] : memref<128x128xf32, #tpu.memory_space<vmem>>, vector<128x128xf32>
    %cst_20 = arith.constant dense<0.000000e+00> : vector<8x128xf32>
    %26 = tpu.matmul %24, %25, %cst_20 {dimension_numbers = #tpu.dot_dimension_numbers<[1], [0], [0], [1], [0, 0, 1, 1], [], []>} : vector<8x128xf32>, vector<128x128xf32>, vector<8x128xf32> -> vector<8x128xf32>
    %c0_21 = arith.constant 0 : index
    %c0_22 = arith.constant 0 : index
    %27 = vector.load %arg9[%c0_21, %c0_22] : memref<1x128xf32, #tpu.memory_space<vmem>>, vector<1x128xf32>
    %28 = vector.broadcast %27 : vector<1x128xf32> to vector<8x128xf32>
    %29 = arith.addf %26, %28 : vector<8x128xf32>
    %c0_23 = arith.constant 0 : index
    %c0_24 = arith.constant 0 : index
    %30 = vector.load %arg10[%c0_23, %c0_24] : memref<8x128xf32, #tpu.memory_space<vmem>>, vector<8x128xf32>
    tpu.vector_store %arg10[%c0_23, %c0_24], %29 {strides = array<i32>} : memref<8x128xf32, #tpu.memory_space<vmem>>, vector<8x128xf32>,
    return
  }
  func.func @transform_0(%arg0: i32) -> (i32, i32) {
    %c0_i32 = arith.constant 0 : i32
    %c0_i32_0 = arith.constant 0 : i32
    return %arg0, %c0_i32 : i32, i32
  }
  func.func @transform_1(%arg0: i32) -> (i32, i32) {
    %c0_i32 = arith.constant 0 : i32
    %c0_i32_0 = arith.constant 0 : i32
    %c0_i32_1 = arith.constant 0 : i32
    return %c0_i32, %c0_i32_0 : i32, i32
  }
  func.func @transform_2(%arg0: i32) -> (i32, i32) {
    %c0_i32 = arith.constant 0 : i32
    %c0_i32_0 = arith.constant 0 : i32
    %c0_i32_1 = arith.constant 0 : i32
    return %c0_i32, %c0_i32_0 : i32, i32
  }
  func.func @transform_3(%arg0: i32) -> (i32, i32) {
    %c0_i32 = arith.constant 0 : i32
    %c0_i32_0 = arith.constant 0 : i32
    %c0_i32_1 = arith.constant 0 : i32
    return %c0_i32, %c0_i32_0 : i32, i32
  }
  func.func @transform_4(%arg0: i32) -> (i32, i32) {
    %c0_i32 = arith.constant 0 : i32
    %c0_i32_0 = arith.constant 0 : i32
    %c0_i32_1 = arith.constant 0 : i32
    return %c0_i32, %c0_i32_0 : i32, i32
  }
  func.func @transform_5(%arg0: i32) -> (i32, i32) {
    %c0_i32 = arith.constant 0 : i32
    %c0_i32_0 = arith.constant 0 : i32
    %c0_i32_1 = arith.constant 0 : i32
    return %c0_i32, %c0_i32_0 : i32, i32
  }
  func.func @transform_6(%arg0: i32) -> (i32, i32) {
    %c0_i32 = arith.constant 0 : i32
    %c0_i32_0 = arith.constant 0 : i32
    %c0_i32_1 = arith.constant 0 : i32
    return %c0_i32, %c0_i32_0 : i32, i32
  }
  func.func @transform_7(%arg0: i32) -> (i32, i32) {
    %c0_i32 = arith.constant 0 : i32
    %c0_i32_0 = arith.constant 0 : i32
    %c0_i32_1 = arith.constant 0 : i32
    return %c0_i32, %c0_i32_0 : i32, i32
  }
  func.func @transform_8(%arg0: i32) -> (i32, i32) {
    %c0_i32 = arith.constant 0 : i32
    %c0_i32_0 = arith.constant 0 : i32
    %c0_i32_1 = arith.constant 0 : i32
    return %c0_i32, %c0_i32_0 : i32, i32
  }
  func.func @transform_9(%arg0: i32) -> (i32, i32) {
    %c0_i32 = arith.constant 0 : i32
    %c0_i32_0 = arith.constant 0 : i32
    return %arg0, %c0_i32 : i32, i32
  }
}

module attributes {stable_mosaic.version = 11 : i64} {
  func.func @_mlp_kernel(%arg0: i32, %arg1: memref<8x16xf32, #tpu.memory_space<vmem>>, %arg2: memref<16x128xf32, #tpu.memory_space<vmem>>, %arg3: memref<1x128xf32, #tpu.memory_space<vmem>>, %arg4: memref<128x128xf32, #tpu.memory_space<vmem>>, %arg5: memref<1x128xf32, #tpu.memory_space<vmem>>, %arg6: memref<128x128xf32, #tpu.memory_space<vmem>>, %arg7: memref<1x128xf32, #tpu.memory_space<vmem>>, %arg8: memref<128x128xf32, #tpu.memory_space<vmem>>, %arg9: memref<1x128xf32, #tpu.memory_space<vmem>>, %arg10: memref<8x128xf32, #tpu.memory_space<vmem>>) attributes {dimension_semantics = [#tpu.dimension_semantics<parallel>], iteration_bounds = array<i64: 1>, scalar_prefetch = 0 : i64, scratch_operands = 0 : i64, tpu.core_type = #tpu.core_type<tc>, window_params = [{transform_indices = @transform_0, window_bounds = array<i64: 8, 16>}, {pipeline_mode = #tpu.pipeline_mode<synchronous>, transform_indices = @transform_1, window_bounds = array<i64: 16, 128>}, {pipeline_mode = #tpu.pipeline_mode<synchronous>, transform_indices = @transform_2, window_bounds = array<i64: 1, 128>}, {pipeline_mode = #tpu.pipeline_mode<synchronous>, transform_indices = @transform_3, window_bounds = array<i64: 128, 128>}, {pipeline_mode = #tpu.pipeline_mode<synchronous>, transform_indices = @transform_4, window_bounds = array<i64: 1, 128>}, {pipeline_mode = #tpu.pipeline_mode<synchronous>, transform_indices = @transform_5, window_bounds = array<i64: 128, 128>}, {pipeline_mode = #tpu.pipeline_mode<synchronous>, transform_indices = @transform_6, window_bounds = array<i64: 1, 128>}, {pipeline_mode = #tpu.pipeline_mode<synchronous>, transform_indices = @transform_7, window_bounds = array<i64: 128, 128>}, {pipeline_mode = #tpu.pipeline_mode<synchronous>, transform_indices = @transform_8, window_bounds = array<i64: 1, 128>}, {transform_indices = @transform_9, window_bounds = array<i64: 8, 128>}]} {
    %c0 = arith.constant 0 : index
    %c0_0 = arith.constant 0 : index
    %0 = vector.load %arg1[%c0, %c0_0] : memref<8x16xf32, #tpu.memory_space<vmem>>, vector<8x16xf32>
    %c0_1 = arith.constant 0 : index
    %c0_2 = arith.constant 0 : index
    %1 = vector.load %arg2[%c0_1, %c0_2] : memref<16x128xf32, #tpu.memory_space<vmem>>, vector<16x128xf32>
    %cst = arith.constant dense<0.000000e+00> : vector<8x128xf32>
    %2 = tpu.matmul %0, %1, %cst {dimension_numbers = #tpu.dot_dimension_numbers<[1], [0], [0], [1], [0, 0, 1, 1], [], []>} : vector<8x16xf32>, vector<16x128xf32>, vector<8x128xf32> -> vector<8x128xf32>
    %c0_3 = arith.constant 0 : index
    %c0_4 = arith.constant 0 : index
    %3 = vector.load %arg3[%c0_3, %c0_4] : memref<1x128xf32, #tpu.memory_space<vmem>>, vector<1x128xf32>
    %4 = vector.broadcast %3 : vector<1x128xf32> to vector<8x128xf32>
    %5 = arith.addf %2, %4 : vector<8x128xf32>
    %cst_5 = arith.constant 0.00999999977 : f32
    %6 = vector.broadcast %cst_5 : f32 to vector<8x128xf32>
    %7 = arith.mulf %6, %5 : vector<8x128xf32>
    %8 = arith.maximumf %5, %7 : vector<8x128xf32>
    %c0_6 = arith.constant 0 : index
    %c0_7 = arith.constant 0 : index
    %9 = vector.load %arg4[%c0_6, %c0_7] : memref<128x128xf32, #tpu.memory_space<vmem>>, vector<128x128xf32>
    %cst_8 = arith.constant dense<0.000000e+00> : vector<8x128xf32>
    %10 = tpu.matmul %8, %9, %cst_8 {dimension_numbers = #tpu.dot_dimension_numbers<[1], [0], [0], [1], [0, 0, 1, 1], [], []>} : vector<8x128xf32>, vector<128x128xf32>, vector<8x128xf32> -> vector<8x128xf32>
    %c0_9 = arith.constant 0 : index
    %c0_10 = arith.constant 0 : index
    %11 = vector.load %arg5[%c0_9, %c0_10] : memref<1x128xf32, #tpu.memory_space<vmem>>, vector<1x128xf32>
    %12 = vector.broadcast %11 : vector<1x128xf32> to vector<8x128xf32>
    %13 = arith.addf %10, %12 : vector<8x128xf32>
    %cst_11 = arith.constant 0.00999999977 : f32
    %14 = vector.broadcast %cst_11 : f32 to vector<8x128xf32>
    %15 = arith.mulf %14, %13 : vector<8x128xf32>
    %16 = arith.maximumf %13, %15 : vector<8x128xf32>
    %c0_12 = arith.constant 0 : index
    %c0_13 = arith.constant 0 : index
    %17 = vector.load %arg6[%c0_12, %c0_13] : memref<128x128xf32, #tpu.memory_space<vmem>>, vector<128x128xf32>
    %cst_14 = arith.constant dense<0.000000e+00> : vector<8x128xf32>
    %18 = tpu.matmul %16, %17, %cst_14 {dimension_numbers = #tpu.dot_dimension_numbers<[1], [0], [0], [1], [0, 0, 1, 1], [], []>} : vector<8x128xf32>, vector<128x128xf32>, vector<8x128xf32> -> vector<8x128xf32>
    %c0_15 = arith.constant 0 : index
    %c0_16 = arith.constant 0 : index
    %19 = vector.load %arg7[%c0_15, %c0_16] : memref<1x128xf32, #tpu.memory_space<vmem>>, vector<1x128xf32>
    %20 = vector.broadcast %19 : vector<1x128xf32> to vector<8x128xf32>
    %21 = arith.addf %18, %20 : vector<8x128xf32>
    %cst_17 = arith.constant 0.00999999977 : f32
    %22 = vector.broadcast %cst_17 : f32 to vector<8x128xf32>
    %23 = arith.mulf %22, %21 : vector<8x128xf32>
    %24 = arith.maximumf %21, %23 : vector<8x128xf32>
    %c0_18 = arith.constant 0 : index
    %c0_19 = arith.constant 0 : index
    %25 = vector.load %arg8[%c0_18, %c0_19] : memref<128x128xf32, #tpu.memory_space<vmem>>, vector<128x128xf32>
    %cst_20 = arith.constant dense<0.000000e+00> : vector<8x128xf32>
    %26 = tpu.matmul %24, %25, %cst_20 {dimension_numbers = #tpu.dot_dimension_numbers<[1], [0], [0], [1], [0, 0, 1, 1], [], []>} : vector<8x128xf32>, vector<128x128xf32>, vector<8x128xf32> -> vector<8x128xf32>
    %c0_21 = arith.constant 0 : index
    %c0_22 = arith.constant 0 : index
    %27 = vector.load %arg9[%c0_21, %c0_22] : memref<1x128xf32, #tpu.memory_space<vmem>>, vector<1x128xf32>
    %28 = vector.broadcast %27 : vector<1x128xf32> to vector<8x128xf32>
    %29 = arith.addf %26, %28 : vector<8x128xf32>
    %c0_23 = arith.constant 0 : index
    %c0_24 = arith.constant 0 : index
    %30 = vector.load %arg10[%c0_23, %c0_24] : memref<8x128xf32, #tpu.memory_space<vmem>>, vector<8x128xf32>
    tpu.vector_store %arg10[%c0_23, %c0_24], %29 {strides = array<i32>} : memref<8x128xf32, #tpu.memory_space<vmem>>, vector<8x128xf32>,
    return
  }
  func.func @transform_0(%arg0: i32) -> (i32, i32) {
    %c0_i32 = arith.constant 0 : i32
    %c0_i32_0 = arith.constant 0 : i32
    return %arg0, %c0_i32 : i32, i32
  }
  func.func @transform_1(%arg0: i32) -> (i32, i32) {
    %c0_i32 = arith.constant 0 : i32
    %c0_i32_0 = arith.constant 0 : i32
    %c0_i32_1 = arith.constant 0 : i32
    return %c0_i32, %c0_i32_0 : i32, i32
  }
  func.func @transform_2(%arg0: i32) -> (i32, i32) {
    %c0_i32 = arith.constant 0 : i32
    %c0_i32_0 = arith.constant 0 : i32
    %c0_i32_1 = arith.constant 0 : i32
    return %c0_i32, %c0_i32_0 : i32, i32
  }
  func.func @transform_3(%arg0: i32) -> (i32, i32) {
    %c0_i32 = arith.constant 0 : i32
    %c0_i32_0 = arith.constant 0 : i32
    %c0_i32_1 = arith.constant 0 : i32
    return %c0_i32, %c0_i32_0 : i32, i32
  }
  func.func @transform_4(%arg0: i32) -> (i32, i32) {
    %c0_i32 = arith.constant 0 : i32
    %c0_i32_0 = arith.constant 0 : i32
    %c0_i32_1 = arith.constant 0 : i32
    return %c0_i32, %c0_i32_0 : i32, i32
  }
  func.func @transform_5(%arg0: i32) -> (i32, i32) {
    %c0_i32 = arith.constant 0 : i32
    %c0_i32_0 = arith.constant 0 : i32
    %c0_i32_1 = arith.constant 0 : i32
    return %c0_i32, %c0_i32_0 : i32, i32
  }
  func.func @transform_6(%arg0: i32) -> (i32, i32) {
    %c0_i32 = arith.constant 0 : i32
    %c0_i32_0 = arith.constant 0 : i32
    %c0_i32_1 = arith.constant 0 : i32
    return %c0_i32, %c0_i32_0 : i32, i32
  }
  func.func @transform_7(%arg0: i32) -> (i32, i32) {
    %c0_i32 = arith.constant 0 : i32
    %c0_i32_0 = arith.constant 0 : i32
    %c0_i32_1 = arith.constant 0 : i32
    return %c0_i32, %c0_i32_0 : i32, i32
  }
  func.func @transform_8(%arg0: i32) -> (i32, i32) {
    %c0_i32 = arith.constant 0 : i32
    %c0_i32_0 = arith.constant 0 : i32
    %c0_i32_1 = arith.constant 0 : i32
    return %c0_i32, %c0_i32_0 : i32, i32
  }
  func.func @transform_9(%arg0: i32) -> (i32, i32) {
    %c0_i32 = arith.constant 0 : i32
    %c0_i32_0 = arith.constant 0 : i32
    return %arg0, %c0_i32 : i32, i32
  }
}

</mosaic_0001>

<bundles_post_ra>
// kernel: tpu_custom_call.1
= control target key start
LH: loop header
LB: loop body
LE: loop exit
PB: predicated region body
PF: predicated region fallthrough
CT: control target
= control target key end

     0   :  { %14 = vsyncpa [#allocation3], 0  ;;  %s1073_s0 = inlined_call_operand.hbm [shape: f32[8,16], index: 0, kind: input, shape index: {}]   ;;  %s1074_s1 = inlined_call_operand.hbm [shape: f32[16,128], index: 1, kind: input, shape index: {}]   ;;  %s1075_s2 = inlined_call_operand.vmem [shape: f32[1,128], index: 2, kind: input, shape index: {}]   ;;  %s1076_s3 = inlined_call_operand.hbm [shape: f32[128,128], index: 3, kind: input, shape index: {}]   ;;  %s1077_s4 = inlined_call_operand.vmem [shape: f32[1,128], index: 4, kind: input, shape index: {}]   ;;  %s1078_s5 = inlined_call_operand.hbm [shape: f32[128,128], index: 5, kind: input, shape index: {}]   ;;  %s1079_s6 = inlined_call_operand.vmem [shape: f32[1,128], index: 6, kind: input, shape index: {}]   ;;  %s1080_s7 = inlined_call_operand.hbm [shape: f32[128,128], index: 7, kind: input, shape index: {}]   ;;  %s1081_s8 = inlined_call_operand.vmem [shape: f32[1,128], index: 8, kind: input, shape index: {}]   ;;  %s1082_s9 = inlined_call_operand.hbm [shape: f32[8,128], index: 9, kind: output, shape index: {}]  }
   0x1   :  { %15 = vsyncpa [#allocation6], 0 }
   0x2   :  { %16 = vsyncpa [#allocation9], 0 }
   0x3   :  { %17 = vsyncpa [#allocation4], 0  ;;  %s883_s30 = smov [#allocation5]   ;;  %s743_s13 = scalar_lea.hbm %s1074_s1, 256 }
   0x4   :  { %s33_s10 = sshll.u32 %s883_s30, 4  ;;  %p744_p0 = scmp.ne.s32.totalorder %s1074_s1, %s743_s13  ;;  %s34_s10 = int_to_ptr.vmem [resolvable:$true] %s33_s10 }
   0x5   :  { %p747_p1 = scmp.lt.u32.totalorder %s743_s13, %s1074_s1 }
   0x7   :  { %p749_p2 = pnand %p747_p1, %p744_p0 }
   0x9   :  { %752 = shalt.err (!%p749_p2)
}
   0xa   :  { %s753_s18 = scalar_lea.vmem %s34_s10, 256  ;;  %p758_p4 = scmp.lt.s32.totalorder %s34_s10, %s34_s10 }
   0xb   :  { %p754_p3 = scmp.ne.s32.totalorder %s34_s10, %s753_s18  ;;  %p759_p5 = scmp.lt.s32.totalorder %s753_s18, %s753_s18 }
   0xd   :  { %p760_p6 = por %p759_p5, %p758_p4 }
   0xf   :  { %p761_p7 = pnand %p760_p6, %p754_p3 }
  0x11   :  { %764 = shalt.err (!%p761_p7)
}
  0x12   :  { %s884_s19 = smov 128   ;;  %s885_s20 = smov 8  }
  0x13   :  { %39 = dma.hbm_to_vmem [thread:$0]  %s1074_s1, 256, %s34_s10, [#allocation6], %s884_s19, %s884_s19, %s885_s20  }
  0x14   :  { %s886_s23 = smov [#allocation8]   ;;  %s887_s25 = smov [#allocation2]  }
  0x15   :  { %s61_s24 = sshll.u32 %s886_s23, 4  ;;  %s24_s26 = sshll.u32 %s887_s25, 4  ;;  %s62_s24 = int_to_ptr.vmem [resolvable:$true] %s61_s24  ;;  %s25_s26 = int_to_ptr.vmem [resolvable:$true] %s24_s26 }
  0x16   :  { %s765_s29 = scalar_lea.hbm %s1078_s5, 2048 }
  0x17   :  { %p766_p8 = scmp.ne.s32.totalorder %s1078_s5, %s765_s29  ;;  %p769_p9 = scmp.lt.u32.totalorder %s765_s29, %s1078_s5 }
  0x19   :  { %p771_p10 = pnand %p769_p9, %p766_p8 }
  0x1b   :  { %774 = shalt.err (!%p771_p10)
}
  0x1c   :  { %s775_s1 = scalar_lea.vmem %s62_s24, 2048  ;;  %p780_p12 = scmp.lt.s32.totalorder %s62_s24, %s62_s24 }
  0x1d   :  { %p776_p11 = scmp.ne.s32.totalorder %s62_s24, %s775_s1  ;;  %p781_p13 = scmp.lt.s32.totalorder %s775_s1, %s775_s1 }
  0x1f   :  { %p782_p0 = por %p781_p13, %p780_p12 }
  0x21   :  { %p783_p1 = pnand %p782_p0, %p776_p11 }
  0x23   :  { %786 = shalt.err (!%p783_p1)
}
  0x24   :  { %67 = dma.hbm_to_vmem [thread:$0]  %s1078_s5, 2048, %s62_s24, [#allocation9], %s884_s19, %s884_s19, %s885_s20  }
  0x25   :  { %s787_s17 = scalar_lea.hbm %s1073_s0, 128 }
  0x26   :  { %p788_p2 = scmp.ne.s32.totalorder %s1073_s0, %s787_s17  ;;  %p791_p3 = scmp.lt.u32.totalorder %s787_s17, %s1073_s0 }
  0x28   :  { %p793_p4 = pnand %p791_p3, %p788_p2 }
  0x2a   :  { %796 = shalt.err (!%p793_p4)
}
  0x2b   :  { %s797_s25 = scalar_lea.vmem %s25_s26, 128  ;;  %p802_p6 = scmp.lt.s32.totalorder %s25_s26, %s25_s26 }
  0x2c   :  { %p798_p5 = scmp.ne.s32.totalorder %s25_s26, %s797_s25  ;;  %p803_p7 = scmp.lt.s32.totalorder %s797_s25, %s797_s25 }
  0x2e   :  { %p804_p8 = por %p803_p7, %p802_p6 }
  0x30   :  { %p805_p9 = pnand %p804_p8, %p798_p5 }
  0x32   :  { %808 = shalt.err (!%p805_p9)
}
  0x33   :  { %27 = dma.hbm_to_vmem [thread:$0]  %s1073_s0, 128, %s25_s26, [#allocation3]  }
  0x34   :  { %s888_s27 = smov [#allocation7]   ;;  %s889_s29 = smov [#allocation10]  }
  0x35   :  { %s47_s28 = sshll.u32 %s888_s27, 4  ;;  %s75_s30 = sshll.u32 %s889_s29, 4  ;;  %s48_s28 = int_to_ptr.vmem [resolvable:$true] %s47_s28  ;;  %s76_s30 = int_to_ptr.vmem [resolvable:$true] %s75_s30 }
  0x36   :  { %s809_s13 = scalar_lea.hbm %s1076_s3, 2048 }
  0x37   :  { %p810_p10 = scmp.ne.s32.totalorder %s1076_s3, %s809_s13  ;;  %p813_p11 = scmp.lt.u32.totalorder %s809_s13, %s1076_s3 }
  0x39   :  { %p815_p12 = pnand %p813_p11, %p810_p10 }
  0x3b   :  { %818 = shalt.err (!%p815_p12)
}
  0x3c   :  { %s819_s0 = scalar_lea.vmem %s48_s28, 2048  ;;  %p824_p0 = scmp.lt.s32.totalorder %s48_s28, %s48_s28 }
  0x3d   :  { %p820_p13 = scmp.ne.s32.totalorder %s48_s28, %s819_s0  ;;  %p825_p1 = scmp.lt.s32.totalorder %s819_s0, %s819_s0 }
  0x3f   :  { %p826_p2 = por %p825_p1, %p824_p0 }
  0x41   :  { %p827_p3 = pnand %p826_p2, %p820_p13 }
  0x43   :  { %830 = shalt.err (!%p827_p3)
}
  0x44   :  { %53 = dma.hbm_to_vmem [thread:$0]  %s1076_s3, 2048, %s48_s28, [#allocation6], %s884_s19, %s884_s19, %s885_s20  }
  0x45   :  { %s831_s21 = scalar_lea.hbm %s1080_s7, 2048 }
  0x46   :  { %p832_p4 = scmp.ne.s32.totalorder %s1080_s7, %s831_s21  ;;  %p835_p5 = scmp.lt.u32.totalorder %s831_s21, %s1080_s7 }
  0x48   :  { %p837_p6 = pnand %p835_p5, %p832_p4 }
  0x4a   :  { %840 = shalt.err (!%p837_p6)
}
  0x4b   :  { %s841_s24 = scalar_lea.vmem %s76_s30, 2048  ;;  %p846_p8 = scmp.lt.s32.totalorder %s76_s30, %s76_s30 }
  0x4c   :  { %p842_p7 = scmp.ne.s32.totalorder %s76_s30, %s841_s24  ;;  %p847_p9 = scmp.lt.s32.totalorder %s841_s24, %s841_s24 }
  0x4e   :  { %p848_p10 = por %p847_p9, %p846_p8 }
  0x50   :  { %p849_p11 = pnand %p848_p10, %p842_p7 }
  0x52   :  { %852 = shalt.err (!%p849_p11)
}
  0x53   :  { %81 = dma.hbm_to_vmem [thread:$0]  %s1080_s7, 2048, %s76_s30, [#allocation9], %s884_s19, %s884_s19, %s885_s20  }
  0x54   :  { %875 = dma.done.wait [#allocation3], 128  }
  0x55   :  { %876 = vsyncadd [#allocation3], 4294967168 }
  0x56   :  { %877 = dma.done.wait [#allocation6], 2304  }
  0x57   :  { %878 = vsyncadd [#allocation6], 4294964992 }
  0x58   :  { %879 = dma.done.wait [#allocation9], 4096  }
  0x59   :  { %880 = vsyncadd [#allocation9], 4294963200  ;;  %v890_v0 = vmov 0.0|0.0   ;;  %vm891_vm0 = vmmov 0   ;;  %v892_v1 = vmov 0.0   ;;  %v100_v2 = vld [vmem:[#allocation5] sm:$0xff] }
  0x5a   :  { %657 = vmatprep.subr.bf16.mxu0 %v890_v0  ;;  %549 = vmatprep.mubr.msk.f32.mxu0 %vm891_vm0, %v892_v1  ;;  %v101_v3 = vld [vmem:[#allocation5 + $0x8] sm:$0xff]  ;;  %v185_v5 = vld [vmem:[#allocation7] sm:$0xff]  ;;  %v186_v6 = vld [vmem:[#allocation7 + $0x8] sm:$0xff]  ;;  %vm109_vm1 = vcmask 130048   ;;  %s893_s11 = smov [#allocation11]  }
  0x5b   :  { %660 = vmatprep.subr.bf16.mxu1 %v890_v0  ;;  %584 = vmatprep.mubr.msk.f32.mxu1 %vm891_vm0, %v892_v1  ;;  %v658_v4 = vpack.c.bf16 %v101_v3, %v100_v2  ;;  %v187_v7 = vld [vmem:[#allocation7 + $0x10] sm:$0xff]  ;;  %v661_v8 = vpack.c.bf16 %v186_v6, %v185_v5  ;;  %v188_v9 = vld [vmem:[#allocation7 + $0x18] sm:$0xff]  ;;  %v99_v10 = vld [vmem:[#allocation2] sm:$0xff]  ;;  %s475_s12 = sshll.u32 %s893_s11, 4  ;;  %s476_s12 = int_to_ptr.vmem [resolvable:$true] %s475_s12 }
  0x5c   :  { %v664_v11 = vpack.c.bf16 %v188_v9, %v187_v7  ;;  %v189_v12 = vld [vmem:[#allocation7 + $0x20] sm:$0xff]  ;;  %v190_v13 = vld [vmem:[#allocation7 + $0x28] sm:$0xff]  ;;  %v191_v15 = vld [vmem:[#allocation7 + $0x30] sm:$0xff]  ;;  %s853_s13 = scalar_lea.vmem %s476_s12, 128  ;;  %p858_p13 = scmp.lt.s32.totalorder %s476_s12, %s476_s12 }
  0x5d   :  { %659 = vmatpush3.bf16.msra.mxu0 %v658_v4  ;;  %662 = vmatpush3.bf16.msra.mxu1 %v661_v8  ;;  %v667_v14 = vpack.c.bf16 %v190_v13, %v189_v12  ;;  %v192_v16 = vld [vmem:[#allocation7 + $0x38] sm:$0xff]  ;;  %v193_v18 = vld [vmem:[#allocation7 + $0x40] sm:$0xff]  ;;  %v194_v19 = vld [vmem:[#allocation7 + $0x48] sm:$0xff]  ;;  %p854_p12 = scmp.ne.s32.totalorder %s476_s12, %s853_s13  ;;  %p859_p0 = scmp.lt.s32.totalorder %s853_s13, %s853_s13 }
  0x5e   :  { %684 = vmatprep.subr.bf16.mxu0 %v890_v0  ;;  %663 = vmatprep.subr.bf16.mxu1 %v890_v0  ;;  %v670_v17 = vpack.c.bf16 %v192_v16, %v191_v15  ;;  %v673_v20 = vpack.c.bf16 %v194_v19, %v193_v18  ;;  %v195_v21 = vld [vmem:[#allocation7 + $0x50] sm:$0xff]  ;;  %v196_v22 = vld [vmem:[#allocation7 + $0x58] sm:$0xff]  ;;  %v197_v24 = vld [vmem:[#allocation7 + $0x60] sm:$0xff] }
  0x5f   :  { %v676_v23 = vpack.c.bf16 %v196_v22, %v195_v21  ;;  %v198_v25 = vld [vmem:[#allocation7 + $0x68] sm:$0xff]  ;;  %v199_v27 = vld [vmem:[#allocation7 + $0x70] sm:$0xff]  ;;  %v200_v28 = vld [vmem:[#allocation7 + $0x78] sm:$0xff]  ;;  %p860_p1 = por %p859_p0, %p858_p13 }
  0x60   :  { %550 = vmatmul.mubr.msk.f32.vlgmr.msra.gmra.mrb[0].mxu0 %vm109_vm1, %v99_v10  ;;  %v679_v26 = vpack.c.bf16 %v198_v25, %v197_v24  ;;  %v682_v29 = vpack.c.bf16 %v200_v28, %v199_v27  ;;  %v280_v30 = vld [vmem:[#allocation8] sm:$0xff]  ;;  %v281_v31 = vld [vmem:[#allocation8 + $0x8] sm:$0xff]  ;;  %v282_v32 = vld [vmem:[#allocation8 + $0x10] sm:$0xff] }
  0x61   :  { %619 = vmatprep.mubr.msk.f32.mxu0 %vm891_vm0, %v892_v1  ;;  %665 = vmatpush3.bf16.msra.mxu1 %v664_v11  ;;  %v685_v33 = vpack.c.bf16 %v281_v31, %v280_v30  ;;  %v283_v34 = vld [vmem:[#allocation8 + $0x18] sm:$0xff]  ;;  %v284_v36 = vld [vmem:[#allocation8 + $0x20] sm:$0xff]  ;;  %v285_v37 = vld [vmem:[#allocation8 + $0x28] sm:$0xff]  ;;  %p861_p2 = pnand %p860_p1, %p854_p12 }
  0x62   :  { %666 = vmatprep.subr.bf16.mxu1 %v890_v0  ;;  %v688_v35 = vpack.c.bf16 %v283_v34, %v282_v32  ;;  %v691_v38 = vpack.c.bf16 %v285_v37, %v284_v36  ;;  %v286_v39 = vld [vmem:[#allocation8 + $0x30] sm:$0xff]  ;;  %v287_v40 = vld [vmem:[#allocation8 + $0x38] sm:$0xff]  ;;  %v288_v42 = vld [vmem:[#allocation8 + $0x40] sm:$0xff] }
  0x63   :  { %686 = vmatpush3.bf16.msra.mxu0 %v685_v33  ;;  %v694_v41 = vpack.c.bf16 %v287_v40, %v286_v39  ;;  %v289_v43 = vld [vmem:[#allocation8 + $0x48] sm:$0xff]  ;;  %v290_v45 = vld [vmem:[#allocation8 + $0x50] sm:$0xff]  ;;  %v291_v46 = vld [vmem:[#allocation8 + $0x58] sm:$0xff] }
  0x64   :  { %687 = vmatprep.subr.bf16.mxu0 %v890_v0  ;;  %v697_v44 = vpack.c.bf16 %v289_v43, %v288_v42  ;;  %v700_v47 = vpack.c.bf16 %v291_v46, %v290_v45  ;;  %v486_v48 = vld [vmem:[%s1075_s2] ss:$0 sm:$0xff]  ;;  %v292_v54 = vld [vmem:[#allocation8 + $0x60] sm:$0xff]  ;;  %v294_v57 = vld [vmem:[#allocation8 + $0x70] sm:$0xff] }
  0x65   :  { %668 = vmatpush3.bf16.msra.mxu1 %v667_v14  ;;  %v293_v55 = vld [vmem:[#allocation8 + $0x68] sm:$0xff]  ;;  %v295_v58 = vld [vmem:[#allocation8 + $0x78] sm:$0xff]  ;;  %v375_v60 = vld [vmem:[#allocation10] sm:$0xff] }
  0x66   :  { %669 = vmatprep.subr.bf16.mxu1 %v890_v0  ;;  %v703_v56 = vpack.c.bf16 %v293_v55, %v292_v54  ;;  %v706_v59 = vpack.c.bf16 %v295_v58, %v294_v57  ;;  %v376_v61 = vld [vmem:[#allocation10 + $0x8] sm:$0xff]  ;;  %v377_v62 = vld [vmem:[#allocation10 + $0x10] sm:$0xff]  ;;  %v378_v2 = vld [vmem:[#allocation10 + $0x18] sm:$0xff] }
  0x67   :  { %689 = vmatpush3.bf16.msra.mxu0 %v688_v35  ;;  %v709_v63 = vpack.c.bf16 %v376_v61, %v375_v60  ;;  %v712_v3 = vpack.c.bf16 %v378_v2, %v377_v62  ;;  %v380_v4 = vld [vmem:[#allocation10 + $0x28] sm:$0xff]  ;;  %v381_v6 = vld [vmem:[#allocation10 + $0x30] sm:$0xff]  ;;  %v382_v7 = vld [vmem:[#allocation10 + $0x38] sm:$0xff] }
  0x68   :  { %690 = vmatprep.subr.bf16.mxu0 %v890_v0  ;;  %v718_v8 = vpack.c.bf16 %v382_v7, %v381_v6  ;;  %v383_v9 = vld [vmem:[#allocation10 + $0x40] sm:$0xff]  ;;  %v384_v10 = vld [vmem:[#allocation10 + $0x48] sm:$0xff]  ;;  %v385_v12 = vld [vmem:[#allocation10 + $0x50] sm:$0xff] }
  0x69   :  { %671 = vmatpush3.bf16.msra.mxu1 %v670_v17  ;;  %v721_v11 = vpack.c.bf16 %v384_v10, %v383_v9  ;;  %v386_v13 = vld [vmem:[#allocation10 + $0x58] sm:$0xff]  ;;  %v488_v15 = vld [vmem:[%s1077_s4] ss:$0 sm:$0xff]  ;;  %v387_v21 = vld [vmem:[#allocation10 + $0x60] sm:$0xff] }
  0x6a   :  { %672 = vmatprep.subr.bf16.mxu1 %v890_v0  ;;  %v724_v14 = vpack.c.bf16 %v386_v13, %v385_v12  ;;  %v388_v22 = vld [vmem:[#allocation10 + $0x68] sm:$0xff]  ;;  %v389_v24 = vld [vmem:[#allocation10 + $0x70] sm:$0xff]  ;;  %v390_v25 = vld [vmem:[#allocation10 + $0x78] sm:$0xff] }
  0x6b   :  { %692 = vmatpush3.bf16.msra.mxu0 %v691_v38  ;;  %v489_v27 = vld [vmem:[%s1079_s6] ss:$0 sm:$0xff] }
  0x6c   :  { %693 = vmatprep.subr.bf16.mxu0 %v890_v0  ;;  %v490_v33 = vld [vmem:[%s1081_s8] ss:$0 sm:$0xff] }
  0x6d   :  { %674 = vmatpush3.bf16.msra.mxu1 %v673_v20 }
  0x6e   :  { %675 = vmatprep.subr.bf16.mxu1 %v890_v0 }
  0x6f   :  { %695 = vmatpush3.bf16.msra.mxu0 %v694_v41 }
  0x70   :  { %696 = vmatprep.subr.bf16.mxu0 %v890_v0 }
  0x71   :  { %677 = vmatpush3.bf16.msra.mxu1 %v676_v23  ;;  %v727_v23 = vpack.c.bf16 %v388_v22, %v387_v21 }
  0x72   :  { %678 = vmatprep.subr.bf16.mxu1 %v890_v0 }
  0x73   :  { %698 = vmatpush3.bf16.msra.mxu0 %v697_v44 }
  0x74   :  { %699 = vmatprep.subr.bf16.mxu0 %v890_v0 }
  0x75   :  { %680 = vmatpush3.bf16.msra.mxu1 %v679_v26  ;;  %v730_v26 = vpack.c.bf16 %v390_v25, %v389_v24 }
  0x76   :  { %681 = vmatprep.subr.bf16.mxu1 %v890_v0 }
  0x77   :  { %701 = vmatpush3.bf16.msra.mxu0 %v700_v47 }
  0x78   :  { %702 = vmatprep.subr.bf16.mxu0 %v890_v0 }
  0x79   :  { %683 = vmatpush3.bf16.msra.mxu1 %v682_v29 }
  0x7a   :  { %708 = vmatprep.subr.bf16.mxu1 %v890_v0 }
  0x7b   :  { %704 = vmatpush3.bf16.msra.mxu0 %v703_v56 }
  0x7c   :  { %705 = vmatprep.subr.bf16.mxu0 %v890_v0 }
  0x7f   :  { %707 = vmatpush3.bf16.msra.mxu0 %v706_v59 }
 0x133   :  { %v179_v49 = vpop.f32.mrb[0].mxu0 }
 0x134   :  { %v180_v50 = vadd.f32 %v486_v48, %v179_v49  ;;  %v551_v51 = vpop.f32.mrb[1].mxu0 }
 0x136   :  { %v183_v52 = vmul.f32 0.01, %v180_v50 }
 0x138   :  { %v184_v53 = vmax.f32 %v180_v50, %v183_v52 }
 0x13a   :  { %585 = vmatmul.mubr.f32.vlgmr.msra.gmra.mrb[0].mxu1 %v184_v53 }
 0x13b   :  { %654 = vmatprep.mubr.msk.f32.mxu1 %vm891_vm0, %v892_v1  ;;  %710 = vmatpush3.bf16.msra.mxu1 %v709_v63  ;;  %v379_v1 = vld [vmem:[#allocation10 + $0x20] sm:$0xff] }
 0x13c   :  { %711 = vmatprep.subr.bf16.mxu1 %v890_v0  ;;  %v715_v5 = vpack.c.bf16 %v380_v4, %v379_v1 }
 0x13f   :  { %713 = vmatpush3.bf16.msra.mxu1 %v712_v3 }
 0x140   :  { %714 = vmatprep.subr.bf16.mxu1 %v890_v0 }
 0x143   :  { %716 = vmatpush3.bf16.msra.mxu1 %v715_v5 }
 0x144   :  { %717 = vmatprep.subr.bf16.mxu1 %v890_v0 }
 0x147   :  { %719 = vmatpush3.bf16.msra.mxu1 %v718_v8 }
 0x148   :  { %720 = vmatprep.subr.bf16.mxu1 %v890_v0 }
 0x14b   :  { %722 = vmatpush3.bf16.msra.mxu1 %v721_v11 }
 0x14c   :  { %723 = vmatprep.subr.bf16.mxu1 %v890_v0 }
 0x14f   :  { %725 = vmatpush3.bf16.msra.mxu1 %v724_v14 }
 0x150   :  { %726 = vmatprep.subr.bf16.mxu1 %v890_v0 }
 0x153   :  { %728 = vmatpush3.bf16.msra.mxu1 %v727_v23 }
 0x154   :  { %729 = vmatprep.subr.bf16.mxu1 %v890_v0 }
 0x157   :  { %731 = vmatpush3.bf16.msra.mxu1 %v730_v26 }
 0x20d   :  { %v274_v16 = vpop.f32.mrb[0].mxu1 }
 0x20e   :  { %v275_v17 = vadd.f32 %v488_v15, %v274_v16  ;;  %v586_v18 = vpop.f32.mrb[1].mxu1 }
 0x210   :  { %v278_v19 = vmul.f32 0.01, %v275_v17 }
 0x212   :  { %v279_v20 = vmax.f32 %v275_v17, %v278_v19 }
 0x214   :  { %620 = vmatmul.mubr.f32.vlgmr.msra.gmra.mrb[2].mxu0 %v279_v20 }
 0x2e7   :  { %v369_v28 = vpop.f32.mrb[2].mxu0 }
 0x2e8   :  { %v370_v29 = vadd.f32 %v489_v27, %v369_v28  ;;  %v621_v30 = vpop.f32.mrb[3].mxu0 }
 0x2ea   :  { %v373_v31 = vmul.f32 0.01, %v370_v29 }
 0x2ec   :  { %v374_v32 = vmax.f32 %v370_v29, %v373_v31 }
 0x2ee   :  { %655 = vmatmul.mubr.f32.vlgmr.msra.gmra.mrb[2].mxu1 %v374_v32 }
 0x3c1   :  { %v464_v0 = vpop.f32.mrb[2].mxu1 }
 0x3c2   :  { %v465_v34 = vadd.f32 %v490_v33, %v464_v0  ;;  %v656_v35 = vpop.f32.mrb[3].mxu1 }
 0x3c4   :  { %468 = vst [vmem:[#allocation11] sm:$0xff] %v465_v34 }
 0x3c5   :  { %864 = shalt.err (!%p861_p2)
}
 0x3c6   :  { %s865_s10 = scalar_lea.hbm %s1082_s9, 128 }
 0x3c7   :  { %p866_p3 = scmp.ne.s32.totalorder %s1082_s9, %s865_s10  ;;  %p869_p4 = scmp.lt.u32.totalorder %s865_s10, %s1082_s9 }
 0x3c9   :  { %p871_p5 = pnand %p869_p4, %p866_p3 }
 0x3cb   :  { %874 = shalt.err (!%p871_p5)
}
 0x3cc   :  { %478 = dma.vmem_to_hbm [thread:$0]  %s476_s12, 128, %s1082_s9, [#allocation4]  }
 0x3cd   :  { %881 = dma.done.wait [#allocation4], 128  }
 0x3ce   :  { %882 = vsyncadd [#allocation4], 4294967168 }
 0x3cf   :  { %482 = vsyncpa [#allocation3], 1 }
 0x3d0   :  { %483 = vsyncpa [#allocation6], 1 }
 0x3d1   :  { %484 = vsyncpa [#allocation9], 1 }
 0x3d2   :  { %485 = vsyncpa [#allocation4], 1 }

// kernel: tpu_custom_call.1
= control target key start
LH: loop header
LB: loop body
LE: loop exit
PB: predicated region body
PF: predicated region fallthrough
CT: control target
= control target key end

     0   :  { %14 = vsyncpa [#allocation3], 0  ;;  %s1073_s0 = inlined_call_operand.hbm [shape: f32[8,16], index: 0, kind: input, shape index: {}]   ;;  %s1074_s1 = inlined_call_operand.hbm [shape: f32[16,128], index: 1, kind: input, shape index: {}]   ;;  %s1075_s2 = inlined_call_operand.vmem [shape: f32[1,128], index: 2, kind: input, shape index: {}]   ;;  %s1076_s3 = inlined_call_operand.hbm [shape: f32[128,128], index: 3, kind: input, shape index: {}]   ;;  %s1077_s4 = inlined_call_operand.vmem [shape: f32[1,128], index: 4, kind: input, shape index: {}]   ;;  %s1078_s5 = inlined_call_operand.hbm [shape: f32[128,128], index: 5, kind: input, shape index: {}]   ;;  %s1079_s6 = inlined_call_operand.vmem [shape: f32[1,128], index: 6, kind: input, shape index: {}]   ;;  %s1080_s7 = inlined_call_operand.hbm [shape: f32[128,128], index: 7, kind: input, shape index: {}]   ;;  %s1081_s8 = inlined_call_operand.vmem [shape: f32[1,128], index: 8, kind: input, shape index: {}]   ;;  %s1082_s9 = inlined_call_operand.hbm [shape: f32[8,128], index: 9, kind: output, shape index: {}]  }
   0x1   :  { %15 = vsyncpa [#allocation6], 0 }
   0x2   :  { %16 = vsyncpa [#allocation9], 0 }
   0x3   :  { %17 = vsyncpa [#allocation4], 0  ;;  %s883_s30 = smov [#allocation5]   ;;  %s743_s13 = scalar_lea.hbm %s1074_s1, 256 }
   0x4   :  { %s33_s10 = sshll.u32 %s883_s30, 4  ;;  %p744_p0 = scmp.ne.s32.totalorder %s1074_s1, %s743_s13  ;;  %s34_s10 = int_to_ptr.vmem [resolvable:$true] %s33_s10 }
   0x5   :  { %p747_p1 = scmp.lt.u32.totalorder %s743_s13, %s1074_s1 }
   0x7   :  { %p749_p2 = pnand %p747_p1, %p744_p0 }
   0x9   :  { %752 = shalt.err (!%p749_p2)
}
   0xa   :  { %s753_s18 = scalar_lea.vmem %s34_s10, 256  ;;  %p758_p4 = scmp.lt.s32.totalorder %s34_s10, %s34_s10 }
   0xb   :  { %p754_p3 = scmp.ne.s32.totalorder %s34_s10, %s753_s18  ;;  %p759_p5 = scmp.lt.s32.totalorder %s753_s18, %s753_s18 }
   0xd   :  { %p760_p6 = por %p759_p5, %p758_p4 }
   0xf   :  { %p761_p7 = pnand %p760_p6, %p754_p3 }
  0x11   :  { %764 = shalt.err (!%p761_p7)
}
  0x12   :  { %s884_s19 = smov 128   ;;  %s885_s20 = smov 8  }
  0x13   :  { %39 = dma.hbm_to_vmem [thread:$0]  %s1074_s1, 256, %s34_s10, [#allocation6], %s884_s19, %s884_s19, %s885_s20  }
  0x14   :  { %s886_s23 = smov [#allocation8]   ;;  %s887_s25 = smov [#allocation2]  }
  0x15   :  { %s61_s24 = sshll.u32 %s886_s23, 4  ;;  %s24_s26 = sshll.u32 %s887_s25, 4  ;;  %s62_s24 = int_to_ptr.vmem [resolvable:$true] %s61_s24  ;;  %s25_s26 = int_to_ptr.vmem [resolvable:$true] %s24_s26 }
  0x16   :  { %s765_s29 = scalar_lea.hbm %s1078_s5, 2048 }
  0x17   :  { %p766_p8 = scmp.ne.s32.totalorder %s1078_s5, %s765_s29  ;;  %p769_p9 = scmp.lt.u32.totalorder %s765_s29, %s1078_s5 }
  0x19   :  { %p771_p10 = pnand %p769_p9, %p766_p8 }
  0x1b   :  { %774 = shalt.err (!%p771_p10)
}
  0x1c   :  { %s775_s1 = scalar_lea.vmem %s62_s24, 2048  ;;  %p780_p12 = scmp.lt.s32.totalorder %s62_s24, %s62_s24 }
  0x1d   :  { %p776_p11 = scmp.ne.s32.totalorder %s62_s24, %s775_s1  ;;  %p781_p13 = scmp.lt.s32.totalorder %s775_s1, %s775_s1 }
  0x1f   :  { %p782_p0 = por %p781_p13, %p780_p12 }
  0x21   :  { %p783_p1 = pnand %p782_p0, %p776_p11 }
  0x23   :  { %786 = shalt.err (!%p783_p1)
}
  0x24   :  { %67 = dma.hbm_to_vmem [thread:$0]  %s1078_s5, 2048, %s62_s24, [#allocation9], %s884_s19, %s884_s19, %s885_s20  }
  0x25   :  { %s787_s17 = scalar_lea.hbm %s1073_s0, 128 }
  0x26   :  { %p788_p2 = scmp.ne.s32.totalorder %s1073_s0, %s787_s17  ;;  %p791_p3 = scmp.lt.u32.totalorder %s787_s17, %s1073_s0 }
  0x28   :  { %p793_p4 = pnand %p791_p3, %p788_p2 }
  0x2a   :  { %796 = shalt.err (!%p793_p4)
}
  0x2b   :  { %s797_s25 = scalar_lea.vmem %s25_s26, 128  ;;  %p802_p6 = scmp.lt.s32.totalorder %s25_s26, %s25_s26 }
  0x2c   :  { %p798_p5 = scmp.ne.s32.totalorder %s25_s26, %s797_s25  ;;  %p803_p7 = scmp.lt.s32.totalorder %s797_s25, %s797_s25 }
  0x2e   :  { %p804_p8 = por %p803_p7, %p802_p6 }
  0x30   :  { %p805_p9 = pnand %p804_p8, %p798_p5 }
  0x32   :  { %808 = shalt.err (!%p805_p9)
}
  0x33   :  { %27 = dma.hbm_to_vmem [thread:$0]  %s1073_s0, 128, %s25_s26, [#allocation3]  }
  0x34   :  { %s888_s27 = smov [#allocation7]   ;;  %s889_s29 = smov [#allocation10]  }
  0x35   :  { %s47_s28 = sshll.u32 %s888_s27, 4  ;;  %s75_s30 = sshll.u32 %s889_s29, 4  ;;  %s48_s28 = int_to_ptr.vmem [resolvable:$true] %s47_s28  ;;  %s76_s30 = int_to_ptr.vmem [resolvable:$true] %s75_s30 }
  0x36   :  { %s809_s13 = scalar_lea.hbm %s1076_s3, 2048 }
  0x37   :  { %p810_p10 = scmp.ne.s32.totalorder %s1076_s3, %s809_s13  ;;  %p813_p11 = scmp.lt.u32.totalorder %s809_s13, %s1076_s3 }
  0x39   :  { %p815_p12 = pnand %p813_p11, %p810_p10 }
  0x3b   :  { %818 = shalt.err (!%p815_p12)
}
  0x3c   :  { %s819_s0 = scalar_lea.vmem %s48_s28, 2048  ;;  %p824_p0 = scmp.lt.s32.totalorder %s48_s28, %s48_s28 }
  0x3d   :  { %p820_p13 = scmp.ne.s32.totalorder %s48_s28, %s819_s0  ;;  %p825_p1 = scmp.lt.s32.totalorder %s819_s0, %s819_s0 }
  0x3f   :  { %p826_p2 = por %p825_p1, %p824_p0 }
  0x41   :  { %p827_p3 = pnand %p826_p2, %p820_p13 }
  0x43   :  { %830 = shalt.err (!%p827_p3)
}
  0x44   :  { %53 = dma.hbm_to_vmem [thread:$0]  %s1076_s3, 2048, %s48_s28, [#allocation6], %s884_s19, %s884_s19, %s885_s20  }
  0x45   :  { %s831_s21 = scalar_lea.hbm %s1080_s7, 2048 }
  0x46   :  { %p832_p4 = scmp.ne.s32.totalorder %s1080_s7, %s831_s21  ;;  %p835_p5 = scmp.lt.u32.totalorder %s831_s21, %s1080_s7 }
  0x48   :  { %p837_p6 = pnand %p835_p5, %p832_p4 }
  0x4a   :  { %840 = shalt.err (!%p837_p6)
}
  0x4b   :  { %s841_s24 = scalar_lea.vmem %s76_s30, 2048  ;;  %p846_p8 = scmp.lt.s32.totalorder %s76_s30, %s76_s30 }
  0x4c   :  { %p842_p7 = scmp.ne.s32.totalorder %s76_s30, %s841_s24  ;;  %p847_p9 = scmp.lt.s32.totalorder %s841_s24, %s841_s24 }
  0x4e   :  { %p848_p10 = por %p847_p9, %p846_p8 }
  0x50   :  { %p849_p11 = pnand %p848_p10, %p842_p7 }
  0x52   :  { %852 = shalt.err (!%p849_p11)
}
  0x53   :  { %81 = dma.hbm_to_vmem [thread:$0]  %s1080_s7, 2048, %s76_s30, [#allocation9], %s884_s19, %s884_s19, %s885_s20  }
  0x54   :  { %875 = dma.done.wait [#allocation3], 128  }
  0x55   :  { %876 = vsyncadd [#allocation3], 4294967168 }
  0x56   :  { %877 = dma.done.wait [#allocation6], 2304  }
  0x57   :  { %878 = vsyncadd [#allocation6], 4294964992 }
  0x58   :  { %879 = dma.done.wait [#allocation9], 4096  }
  0x59   :  { %880 = vsyncadd [#allocation9], 4294963200  ;;  %v890_v0 = vmov 0.0|0.0   ;;  %vm891_vm0 = vmmov 0   ;;  %v892_v1 = vmov 0.0   ;;  %v100_v2 = vld [vmem:[#allocation5] sm:$0xff] }
  0x5a   :  { %657 = vmatprep.subr.bf16.mxu0 %v890_v0  ;;  %549 = vmatprep.mubr.msk.f32.mxu0 %vm891_vm0, %v892_v1  ;;  %v101_v3 = vld [vmem:[#allocation5 + $0x8] sm:$0xff]  ;;  %v185_v5 = vld [vmem:[#allocation7] sm:$0xff]  ;;  %v186_v6 = vld [vmem:[#allocation7 + $0x8] sm:$0xff]  ;;  %vm109_vm1 = vcmask 130048   ;;  %s893_s11 = smov [#allocation11]  }
  0x5b   :  { %660 = vmatprep.subr.bf16.mxu1 %v890_v0  ;;  %584 = vmatprep.mubr.msk.f32.mxu1 %vm891_vm0, %v892_v1  ;;  %v658_v4 = vpack.c.bf16 %v101_v3, %v100_v2  ;;  %v187_v7 = vld [vmem:[#allocation7 + $0x10] sm:$0xff]  ;;  %v661_v8 = vpack.c.bf16 %v186_v6, %v185_v5  ;;  %v188_v9 = vld [vmem:[#allocation7 + $0x18] sm:$0xff]  ;;  %v99_v10 = vld [vmem:[#allocation2] sm:$0xff]  ;;  %s475_s12 = sshll.u32 %s893_s11, 4  ;;  %s476_s12 = int_to_ptr.vmem [resolvable:$true] %s475_s12 }
  0x5c   :  { %v664_v11 = vpack.c.bf16 %v188_v9, %v187_v7  ;;  %v189_v12 = vld [vmem:[#allocation7 + $0x20] sm:$0xff]  ;;  %v190_v13 = vld [vmem:[#allocation7 + $0x28] sm:$0xff]  ;;  %v191_v15 = vld [vmem:[#allocation7 + $0x30] sm:$0xff]  ;;  %s853_s13 = scalar_lea.vmem %s476_s12, 128  ;;  %p858_p13 = scmp.lt.s32.totalorder %s476_s12, %s476_s12 }
  0x5d   :  { %659 = vmatpush3.bf16.msra.mxu0 %v658_v4  ;;  %662 = vmatpush3.bf16.msra.mxu1 %v661_v8  ;;  %v667_v14 = vpack.c.bf16 %v190_v13, %v189_v12  ;;  %v192_v16 = vld [vmem:[#allocation7 + $0x38] sm:$0xff]  ;;  %v193_v18 = vld [vmem:[#allocation7 + $0x40] sm:$0xff]  ;;  %v194_v19 = vld [vmem:[#allocation7 + $0x48] sm:$0xff]  ;;  %p854_p12 = scmp.ne.s32.totalorder %s476_s12, %s853_s13  ;;  %p859_p0 = scmp.lt.s32.totalorder %s853_s13, %s853_s13 }
  0x5e   :  { %684 = vmatprep.subr.bf16.mxu0 %v890_v0  ;;  %663 = vmatprep.subr.bf16.mxu1 %v890_v0  ;;  %v670_v17 = vpack.c.bf16 %v192_v16, %v191_v15  ;;  %v673_v20 = vpack.c.bf16 %v194_v19, %v193_v18  ;;  %v195_v21 = vld [vmem:[#allocation7 + $0x50] sm:$0xff]  ;;  %v196_v22 = vld [vmem:[#allocation7 + $0x58] sm:$0xff]  ;;  %v197_v24 = vld [vmem:[#allocation7 + $0x60] sm:$0xff] }
  0x5f   :  { %v676_v23 = vpack.c.bf16 %v196_v22, %v195_v21  ;;  %v198_v25 = vld [vmem:[#allocation7 + $0x68] sm:$0xff]  ;;  %v199_v27 = vld [vmem:[#allocation7 + $0x70] sm:$0xff]  ;;  %v200_v28 = vld [vmem:[#allocation7 + $0x78] sm:$0xff]  ;;  %p860_p1 = por %p859_p0, %p858_p13 }
  0x60   :  { %550 = vmatmul.mubr.msk.f32.vlgmr.msra.gmra.mrb[0].mxu0 %vm109_vm1, %v99_v10  ;;  %v679_v26 = vpack.c.bf16 %v198_v25, %v197_v24  ;;  %v682_v29 = vpack.c.bf16 %v200_v28, %v199_v27  ;;  %v280_v30 = vld [vmem:[#allocation8] sm:$0xff]  ;;  %v281_v31 = vld [vmem:[#allocation8 + $0x8] sm:$0xff]  ;;  %v282_v32 = vld [vmem:[#allocation8 + $0x10] sm:$0xff] }
  0x61   :  { %619 = vmatprep.mubr.msk.f32.mxu0 %vm891_vm0, %v892_v1  ;;  %665 = vmatpush3.bf16.msra.mxu1 %v664_v11  ;;  %v685_v33 = vpack.c.bf16 %v281_v31, %v280_v30  ;;  %v283_v34 = vld [vmem:[#allocation8 + $0x18] sm:$0xff]  ;;  %v284_v36 = vld [vmem:[#allocation8 + $0x20] sm:$0xff]  ;;  %v285_v37 = vld [vmem:[#allocation8 + $0x28] sm:$0xff]  ;;  %p861_p2 = pnand %p860_p1, %p854_p12 }
  0x62   :  { %666 = vmatprep.subr.bf16.mxu1 %v890_v0  ;;  %v688_v35 = vpack.c.bf16 %v283_v34, %v282_v32  ;;  %v691_v38 = vpack.c.bf16 %v285_v37, %v284_v36  ;;  %v286_v39 = vld [vmem:[#allocation8 + $0x30] sm:$0xff]  ;;  %v287_v40 = vld [vmem:[#allocation8 + $0x38] sm:$0xff]  ;;  %v288_v42 = vld [vmem:[#allocation8 + $0x40] sm:$0xff] }
  0x63   :  { %686 = vmatpush3.bf16.msra.mxu0 %v685_v33  ;;  %v694_v41 = vpack.c.bf16 %v287_v40, %v286_v39  ;;  %v289_v43 = vld [vmem:[#allocation8 + $0x48] sm:$0xff]  ;;  %v290_v45 = vld [vmem:[#allocation8 + $0x50] sm:$0xff]  ;;  %v291_v46 = vld [vmem:[#allocation8 + $0x58] sm:$0xff] }
  0x64   :  { %687 = vmatprep.subr.bf16.mxu0 %v890_v0  ;;  %v697_v44 = vpack.c.bf16 %v289_v43, %v288_v42  ;;  %v700_v47 = vpack.c.bf16 %v291_v46, %v290_v45  ;;  %v486_v48 = vld [vmem:[%s1075_s2] ss:$0 sm:$0xff]  ;;  %v292_v54 = vld [vmem:[#allocation8 + $0x60] sm:$0xff]  ;;  %v294_v57 = vld [vmem:[#allocation8 + $0x70] sm:$0xff] }
  0x65   :  { %668 = vmatpush3.bf16.msra.mxu1 %v667_v14  ;;  %v293_v55 = vld [vmem:[#allocation8 + $0x68] sm:$0xff]  ;;  %v295_v58 = vld [vmem:[#allocation8 + $0x78] sm:$0xff]  ;;  %v375_v60 = vld [vmem:[#allocation10] sm:$0xff] }
  0x66   :  { %669 = vmatprep.subr.bf16.mxu1 %v890_v0  ;;  %v703_v56 = vpack.c.bf16 %v293_v55, %v292_v54  ;;  %v706_v59 = vpack.c.bf16 %v295_v58, %v294_v57  ;;  %v376_v61 = vld [vmem:[#allocation10 + $0x8] sm:$0xff]  ;;  %v377_v62 = vld [vmem:[#allocation10 + $0x10] sm:$0xff]  ;;  %v378_v2 = vld [vmem:[#allocation10 + $0x18] sm:$0xff] }
  0x67   :  { %689 = vmatpush3.bf16.msra.mxu0 %v688_v35  ;;  %v709_v63 = vpack.c.bf16 %v376_v61, %v375_v60  ;;  %v712_v3 = vpack.c.bf16 %v378_v2, %v377_v62  ;;  %v380_v4 = vld [vmem:[#allocation10 + $0x28] sm:$0xff]  ;;  %v381_v6 = vld [vmem:[#allocation10 + $0x30] sm:$0xff]  ;;  %v382_v7 = vld [vmem:[#allocation10 + $0x38] sm:$0xff] }
  0x68   :  { %690 = vmatprep.subr.bf16.mxu0 %v890_v0  ;;  %v718_v8 = vpack.c.bf16 %v382_v7, %v381_v6  ;;  %v383_v9 = vld [vmem:[#allocation10 + $0x40] sm:$0xff]  ;;  %v384_v10 = vld [vmem:[#allocation10 + $0x48] sm:$0xff]  ;;  %v385_v12 = vld [vmem:[#allocation10 + $0x50] sm:$0xff] }
  0x69   :  { %671 = vmatpush3.bf16.msra.mxu1 %v670_v17  ;;  %v721_v11 = vpack.c.bf16 %v384_v10, %v383_v9  ;;  %v386_v13 = vld [vmem:[#allocation10 + $0x58] sm:$0xff]  ;;  %v488_v15 = vld [vmem:[%s1077_s4] ss:$0 sm:$0xff]  ;;  %v387_v21 = vld [vmem:[#allocation10 + $0x60] sm:$0xff] }
  0x6a   :  { %672 = vmatprep.subr.bf16.mxu1 %v890_v0  ;;  %v724_v14 = vpack.c.bf16 %v386_v13, %v385_v12  ;;  %v388_v22 = vld [vmem:[#allocation10 + $0x68] sm:$0xff]  ;;  %v389_v24 = vld [vmem:[#allocation10 + $0x70] sm:$0xff]  ;;  %v390_v25 = vld [vmem:[#allocation10 + $0x78] sm:$0xff] }
  0x6b   :  { %692 = vmatpush3.bf16.msra.mxu0 %v691_v38  ;;  %v489_v27 = vld [vmem:[%s1079_s6] ss:$0 sm:$0xff] }
  0x6c   :  { %693 = vmatprep.subr.bf16.mxu0 %v890_v0  ;;  %v490_v33 = vld [vmem:[%s1081_s8] ss:$0 sm:$0xff] }
  0x6d   :  { %674 = vmatpush3.bf16.msra.mxu1 %v673_v20 }
  0x6e   :  { %675 = vmatprep.subr.bf16.mxu1 %v890_v0 }
  0x6f   :  { %695 = vmatpush3.bf16.msra.mxu0 %v694_v41 }
  0x70   :  { %696 = vmatprep.subr.bf16.mxu0 %v890_v0 }
  0x71   :  { %677 = vmatpush3.bf16.msra.mxu1 %v676_v23  ;;  %v727_v23 = vpack.c.bf16 %v388_v22, %v387_v21 }
  0x72   :  { %678 = vmatprep.subr.bf16.mxu1 %v890_v0 }
  0x73   :  { %698 = vmatpush3.bf16.msra.mxu0 %v697_v44 }
  0x74   :  { %699 = vmatprep.subr.bf16.mxu0 %v890_v0 }
  0x75   :  { %680 = vmatpush3.bf16.msra.mxu1 %v679_v26  ;;  %v730_v26 = vpack.c.bf16 %v390_v25, %v389_v24 }
  0x76   :  { %681 = vmatprep.subr.bf16.mxu1 %v890_v0 }
  0x77   :  { %701 = vmatpush3.bf16.msra.mxu0 %v700_v47 }
  0x78   :  { %702 = vmatprep.subr.bf16.mxu0 %v890_v0 }
  0x79   :  { %683 = vmatpush3.bf16.msra.mxu1 %v682_v29 }
  0x7a   :  { %708 = vmatprep.subr.bf16.mxu1 %v890_v0 }
  0x7b   :  { %704 = vmatpush3.bf16.msra.mxu0 %v703_v56 }
  0x7c   :  { %705 = vmatprep.subr.bf16.mxu0 %v890_v0 }
  0x7f   :  { %707 = vmatpush3.bf16.msra.mxu0 %v706_v59 }
 0x133   :  { %v179_v49 = vpop.f32.mrb[0].mxu0 }
 0x134   :  { %v180_v50 = vadd.f32 %v486_v48, %v179_v49  ;;  %v551_v51 = vpop.f32.mrb[1].mxu0 }
 0x136   :  { %v183_v52 = vmul.f32 0.01, %v180_v50 }
 0x138   :  { %v184_v53 = vmax.f32 %v180_v50, %v183_v52 }
 0x13a   :  { %585 = vmatmul.mubr.f32.vlgmr.msra.gmra.mrb[0].mxu1 %v184_v53 }
 0x13b   :  { %654 = vmatprep.mubr.msk.f32.mxu1 %vm891_vm0, %v892_v1  ;;  %710 = vmatpush3.bf16.msra.mxu1 %v709_v63  ;;  %v379_v1 = vld [vmem:[#allocation10 + $0x20] sm:$0xff] }
 0x13c   :  { %711 = vmatprep.subr.bf16.mxu1 %v890_v0  ;;  %v715_v5 = vpack.c.bf16 %v380_v4, %v379_v1 }
 0x13f   :  { %713 = vmatpush3.bf16.msra.mxu1 %v712_v3 }
 0x140   :  { %714 = vmatprep.subr.bf16.mxu1 %v890_v0 }
 0x143   :  { %716 = vmatpush3.bf16.msra.mxu1 %v715_v5 }
 0x144   :  { %717 = vmatprep.subr.bf16.mxu1 %v890_v0 }
 0x147   :  { %719 = vmatpush3.bf16.msra.mxu1 %v718_v8 }
 0x148   :  { %720 = vmatprep.subr.bf16.mxu1 %v890_v0 }
 0x14b   :  { %722 = vmatpush3.bf16.msra.mxu1 %v721_v11 }
 0x14c   :  { %723 = vmatprep.subr.bf16.mxu1 %v890_v0 }
 0x14f   :  { %725 = vmatpush3.bf16.msra.mxu1 %v724_v14 }
 0x150   :  { %726 = vmatprep.subr.bf16.mxu1 %v890_v0 }
 0x153   :  { %728 = vmatpush3.bf16.msra.mxu1 %v727_v23 }
 0x154   :  { %729 = vmatprep.subr.bf16.mxu1 %v890_v0 }
 0x157   :  { %731 = vmatpush3.bf16.msra.mxu1 %v730_v26 }
 0x20d   :  { %v274_v16 = vpop.f32.mrb[0].mxu1 }
 0x20e   :  { %v275_v17 = vadd.f32 %v488_v15, %v274_v16  ;;  %v586_v18 = vpop.f32.mrb[1].mxu1 }
 0x210   :  { %v278_v19 = vmul.f32 0.01, %v275_v17 }
 0x212   :  { %v279_v20 = vmax.f32 %v275_v17, %v278_v19 }
 0x214   :  { %620 = vmatmul.mubr.f32.vlgmr.msra.gmra.mrb[2].mxu0 %v279_v20 }
 0x2e7   :  { %v369_v28 = vpop.f32.mrb[2].mxu0 }
 0x2e8   :  { %v370_v29 = vadd.f32 %v489_v27, %v369_v28  ;;  %v621_v30 = vpop.f32.mrb[3].mxu0 }
 0x2ea   :  { %v373_v31 = vmul.f32 0.01, %v370_v29 }
 0x2ec   :  { %v374_v32 = vmax.f32 %v370_v29, %v373_v31 }
 0x2ee   :  { %655 = vmatmul.mubr.f32.vlgmr.msra.gmra.mrb[2].mxu1 %v374_v32 }
 0x3c1   :  { %v464_v0 = vpop.f32.mrb[2].mxu1 }
 0x3c2   :  { %v465_v34 = vadd.f32 %v490_v33, %v464_v0  ;;  %v656_v35 = vpop.f32.mrb[3].mxu1 }
 0x3c4   :  { %468 = vst [vmem:[#allocation11] sm:$0xff] %v465_v34 }
 0x3c5   :  { %864 = shalt.err (!%p861_p2)
}
 0x3c6   :  { %s865_s10 = scalar_lea.hbm %s1082_s9, 128 }
 0x3c7   :  { %p866_p3 = scmp.ne.s32.totalorder %s1082_s9, %s865_s10  ;;  %p869_p4 = scmp.lt.u32.totalorder %s865_s10, %s1082_s9 }
 0x3c9   :  { %p871_p5 = pnand %p869_p4, %p866_p3 }
 0x3cb   :  { %874 = shalt.err (!%p871_p5)
}
 0x3cc   :  { %478 = dma.vmem_to_hbm [thread:$0]  %s476_s12, 128, %s1082_s9, [#allocation4]  }
 0x3cd   :  { %881 = dma.done.wait [#allocation4], 128  }
 0x3ce   :  { %882 = vsyncadd [#allocation4], 4294967168 }
 0x3cf   :  { %482 = vsyncpa [#allocation3], 1 }
 0x3d0   :  { %483 = vsyncpa [#allocation6], 1 }
 0x3d1   :  { %484 = vsyncpa [#allocation9], 1 }
 0x3d2   :  { %485 = vsyncpa [#allocation4], 1 }

</bundles_post_ra>
